<compile_context>
chip_gen: v6e
topology: v6e:2x2x1
jax: 0.10.0
libtpu: 0.0.40
codegen_flags: <defaults>
</compile_context>

<pallas_src>
import functools

import jax
import jax.numpy as jnp
from jax.experimental import pallas as pl
from jax.experimental.pallas import tpu as pltpu

_EPS = 1e-10


def l2norm_kernel(x_ref, o_ref):
    x = x_ref[...].astype(jnp.float32)
    # Sum of squares over the feature (lane) axis -> [blk, 1]  (XLU reduce).
    ss = jnp.sum(x * x, axis=-1, keepdims=True)
    inv = jax.lax.rsqrt(ss + _EPS)          # EUP rsqrt == 1/sqrt(sum + eps)
    o_ref[...] = (x * inv).astype(o_ref.dtype)


def _round_up(n, m):
    return ((n + m - 1) // m) * m


@functools.partial(jax.jit, static_argnames=("block_b",))
def l2norm(x, block_b=512):
    """x: [B, D].  Returns x row-normalized by its L2 norm (dim=1)."""
    B, D = x.shape
    itemsize = jnp.dtype(x.dtype).itemsize

    # Dtype-aware sublane granularity: 8 for f32, 16 for bf16, 32 for 1-byte.
    sub = max(8, 32 // itemsize)

    # VMEM budget for pipeline buffers (double-buffered input + output):
    #   4 * blk * D * itemsize <= ~12 MiB
    # fits the default scoped VMEM limit on v5e (16 MiB) and v6e/v7x (32 MiB)
    # without overriding vmem_limit_bytes.
    vmem_budget = 12 * 1024 * 1024
    blk_cap_vmem = max(sub, (vmem_budget // (4 * D * itemsize)) // sub * sub)
    # TODO(synk): for extreme D (f32 D >~ 190K even a single (8, D) slab no
    # longer fits VMEM) a D-tiled two-pass variant (accumulate sum-of-squares
    # over an 'arbitrary' D axis, then scale) would be required.

    # Aim for >= ~8 grid steps so the HBM pipeline overlaps and the
    # 'parallel' batch axis can be split across both v7x TensorCores.
    target_steps = 8
    blk_for_steps = _round_up(pl.cdiv(B, target_steps), sub)

    blk = max(sub, min(block_b, blk_cap_vmem, blk_for_steps))
    grid = (pl.cdiv(B, blk),)   # partial last block is masked by Pallas

    return pl.pallas_call(
        l2norm_kernel,
        out_shape=jax.ShapeDtypeStruct((B, D), x.dtype),
        grid_spec=pltpu.PrefetchScalarGridSpec(
            num_scalar_prefetch=0,
            grid=grid,
            in_specs=[pl.BlockSpec((blk, D), lambda i: (i, 0))],
            out_specs=pl.BlockSpec((blk, D), lambda i: (i, 0)),
        ),
        compiler_params=pltpu.CompilerParams(
            dimension_semantics=("parallel",),
        ),
        cost_estimate=pl.CostEstimate(
            flops=3 * B * D,            # square, reduce, scale
            transcendentals=B,          # one rsqrt per row
            bytes_accessed=2 * B * D * itemsize,
        ),
    )(x)


def reference_forward(x):
    norm = jnp.sqrt(jnp.sum(x * x, axis=1, keepdims=True) + _EPS)
    return x / norm


if __name__ == "__main__":
    key = jax.random.PRNGKey(0)

    # Small 2-D [batch, features] input, consistent with the module.
    batch, features = 64, 256            # 8 grid steps of 8 rows each
    x = jax.random.normal(key, (batch, features), dtype=jnp.float32)

    out = jax.block_until_ready(l2norm(x))
    ref = reference_forward(x)
    assert out.shape == (batch, features), out.shape
    assert jnp.allclose(out, ref, atol=1e-5, rtol=1e-5), "mismatch vs reference"

    # Batch that is not a multiple of the tile / sublane (partial last block).
    x2 = jax.random.normal(jax.random.PRNGKey(1), (13, features), dtype=jnp.float32)
    out2 = jax.block_until_ready(l2norm(x2))
    assert out2.shape == (13, features), out2.shape
    assert jnp.allclose(out2, reference_forward(x2), atol=1e-5, rtol=1e-5)

    print("KERNEL_OK")
</pallas_src>

<mosaic_0001>
module attributes {stable_mosaic.version = 11 : i64} {
  func.func @l2norm_kernel(%arg0: i32, %arg1: memref<8x256xf32, #tpu.memory_space<vmem>>, %arg2: memref<8x256xf32, #tpu.memory_space<vmem>>) attributes {dimension_semantics = [#tpu.dimension_semantics<parallel>], iteration_bounds = array<i64: 8>, scalar_prefetch = 0 : i64, scratch_operands = 0 : i64, tpu.core_type = #tpu.core_type<tc>, window_params = [{transform_indices = @transform_0, window_bounds = array<i64: 8, 256>}, {transform_indices = @transform_1, window_bounds = array<i64: 8, 256>}]} {
    %c0 = arith.constant 0 : index
    %c0_0 = arith.constant 0 : index
    %0 = vector.load %arg1[%c0, %c0_0] : memref<8x256xf32, #tpu.memory_space<vmem>>, vector<8x256xf32>
    %1 = arith.mulf %0, %0 : vector<8x256xf32>
    %cst = arith.constant dense<0.000000e+00> : vector<8xf32>
    %2 = vector.multi_reduction <add>, %1, %cst [1] : vector<8x256xf32> to vector<8xf32>
    %3 = vector.shape_cast %2 : vector<8xf32> to vector<8x1xf32>
    %cst_1 = arith.constant 1.000000e-10 : f32
    %4 = vector.broadcast %cst_1 : f32 to vector<8x1xf32>
    %5 = arith.addf %3, %4 : vector<8x1xf32>
    %6 = math.rsqrt %5 : vector<8x1xf32>
    %7 = vector.broadcast %6 : vector<8x1xf32> to vector<8x256xf32>
    %8 = arith.mulf %0, %7 : vector<8x256xf32>
    %c0_2 = arith.constant 0 : index
    %c0_3 = arith.constant 0 : index
    %9 = vector.load %arg2[%c0_2, %c0_3] : memref<8x256xf32, #tpu.memory_space<vmem>>, vector<8x256xf32>
    tpu.vector_store %arg2[%c0_2, %c0_3], %8 {strides = array<i32>} : memref<8x256xf32, #tpu.memory_space<vmem>>, vector<8x256xf32>,
    return
  }
  func.func @transform_0(%arg0: i32) -> (i32, i32) {
    %c0_i32 = arith.constant 0 : i32
    %c0_i32_0 = arith.constant 0 : i32
    return %arg0, %c0_i32 : i32, i32
  }
  func.func @transform_1(%arg0: i32) -> (i32, i32) {
    %c0_i32 = arith.constant 0 : i32
    %c0_i32_0 = arith.constant 0 : i32
    return %arg0, %c0_i32 : i32, i32
  }
}

</mosaic_0001>

<bundles_post_ra>
// kernel: l2norm.1
= control target key start
LH: loop header
LB: loop body
LE: loop exit
PB: predicated region body
PF: predicated region fallthrough
CT: control target
= control target key end

     0   :  { %6 = vsyncpa [#allocation3], 0  ;;  %s546_s0 = inlined_call_operand.hbm [shape: f32[64,256], index: 0, kind: input, shape index: {}]   ;;  %s547_s1 = inlined_call_operand.hbm [shape: f32[64,256], index: 1, kind: output, shape index: {}]  }
   0x1   :  { %8 = vsyncpa [#allocation3 + $0x1], 0 }
   0x2   :  { %9 = vsyncpa [#allocation4], 0 }
   0x3   :  { %11 = vsyncpa [#allocation4 + $0x1], 0  ;;  %s401_s6 = smov 0   ;;  %s403_s7 = smov 0  }
   0x4   :  { %s405_s8 = smov 0   ;;  %s407_s9 = smov 0  }
   0x5 LB: > { %s422_s10 = sadd.s32 4294967295, %s387_s9   ;;  %s231_s11 = sadd.s32 4294967294, %s387_s9   ;;  %s387_s9 = sphi %s407_s9, %s563_s9   ;;  %s383_s8 = sphi %s405_s8, %s562_s8   ;;  %s379_s7 = sphi %s403_s7, %s561_s7   ;;  %s375_s6 = sphi %s401_s6, %s560_s6  }
   0x6   : > { %s426_s12 = sadd.s32 1, %s387_s9   ;;  %s24_s13 = sadd.s32 1, %s383_s8 }
   0x7   : > { %s21_s14 = ssub.s32 %s387_s9, %s426_s12  ;;  %p31_p0 = scmp.ne.s32.totalorder %s383_s8, %s379_s7 }
   0x8   : > { %p22_p1 = scmp.eq.s32.totalorder %s21_s14, 0  ;;  %p32_p2 = scmp.eq.s32.totalorder %s387_s9, 0 }
   0x9   : > { %p37_p3 = scmp.ne.s32.totalorder %s379_s7, %s375_s6  ;;  %p38_p4 = scmp.eq.s32.totalorder %s422_s10, 0 }
   0xa   : > { %s438_s15 = scalar_select %p22_p1, %s383_s8, %s24_s13  }
   0xb   : > { %p440_p5 = por %p32_p2, %p31_p0  ;;  %p444_p6 = por %p38_p4, %p37_p3 }
   0xc   : > { %p61_p7 = scmp.eq.s32.totalorder %s422_s10, 7  ;;  %p67_p8 = scmp.eq.s32.totalorder %s231_s11, 7 }
   0xd   : > { %s551_s17 = scalar_select %p444_p6, 1, 0 }
   0xe   : > { %p259_p9 = scmp.lt.s32.totalorder %s387_s9, 8  ;;  %p450_p10 = por %p61_p7, %p31_p0 }
   0xf   : > { %p454_p11 = por %p67_p8, %p37_p3  ;;  %s87_s20 = sand.u32 1, %s383_s8  }
  0x10   : > { %s552_s18 = scalar_select %p450_p10, 1, 0 }
  0x11   : > { %s553_s19 = scalar_select %p454_p11, 1, 0 }
  0x12   : > { %s245_s21 = sshll.u32 %s387_s9, 8  ;;  %s234_s22 = sshll.u32 %s87_s20, 4 }
  0x13   : > { %s463_s25 = scalar_lea.hbm %s546_s0, %s245_s21  ;;  %s91_s26 = scalar_lea.vmem [#allocation2], %s234_s22 }
  0x14   : > { %s99_s27 = sshll.u32 %s91_s26, 4  ;;  %p467_p12 = pnand %p259_p9, %p440_p5  ;;  %s471_s27 = int_to_ptr.vmem [resolvable:$true] %s99_s27 }
  0x15   : > { %s88_s29 = scalar_lea.sflag [#allocation3], %s87_s20  ;;  %s295_s30 = scalar_lea.hbm %s463_s25, 256 }
  0x16   : > { %p296_p1 = scmp.ne.s32.totalorder %s463_s25, %s295_s30  ;;  %p297_p2 = pneg %p467_p12 }
  0x17   : > { %s300_s4 = scalar_lea.hbm %s546_s0, 2048  ;;  %p301_p5 = scmp.lt.s32.totalorder %s463_s25, %s546_s0 }
  0x18   : > { %p298_p3 = pnand %p297_p2, %p296_p1  ;;  %p302_p7 = scmp.lt.s32.totalorder %s300_s4, %s295_s30 }
  0x1a   : > { %p299_p4 = pneg %p298_p3  ;;  %p303_p8 = por %p302_p7, %p301_p5 }
  0x1c   : > { %p304_p9 = pnand %p303_p8, %p299_p4 }
  0x1e   : > { %307 = shalt.err (!%p304_p9)
}
  0x1f   : > { %s308_s13 = scalar_lea.vmem %s471_s27, 256  ;;  %s389_s14 = smov [#allocation2]  }
  0x20   : > { %p309_p13 = scmp.ne.s32.totalorder %s471_s27, %s308_s13  ;;  %s313_s16 = sshll.u32 %s389_s14, 4  ;;  %s314_s16 = int_to_ptr.vmem [resolvable:$false] %s313_s16 }
  0x21   : > { %s315_s20 = scalar_lea.vmem %s314_s16, 512  ;;  %p316_p3 = scmp.lt.s32.totalorder %s471_s27, %s314_s16 }
  0x22   : > { %p311_p0 = pnand %p309_p13, %p297_p2  ;;  %p317_p11 = scmp.lt.s32.totalorder %s315_s20, %s308_s13 }
  0x24   : > { %p312_p1 = pneg %p311_p0  ;;  %p318_p10 = por %p317_p11, %p316_p3 }
  0x26   : > { %p319_p6 = pnand %p318_p10, %p312_p1 }
  0x28   : > { %322 = shalt.err (!%p319_p6)
}
  0x29   : > { %254 = dma.hbm_to_vmem [thread:$0]  (!%p467_p12), %s463_s25, 256, %s471_s27, %s88_s29  }
  0x2a   : > { %p555_p4 = scmp.lt.s32.totalorder %s387_s9, 9  ;;  %p556_p5 = scmp.ge.s32.totalorder %s387_s9, 1 }
  0x2c   : > { %p105_p13 = pnand %p556_p5, %p555_p4 }
  0x2d   : > { %s498_s21 = sand.u32 (!%p105_p13), 1, %s379_s7   ;;  %p557_p6 = scmp.ne.s32.totalorder (!%p105_p13), %s551_s17, 0 }
  0x2e   : > { %108 = sbr.rel (%p105_p13) target bundleno = 226 (0xe2), region = 24  ;;  %s238_s22 = sshll.u32 (!%p105_p13), %s498_s21, 4 }
  0x2f   : > { %s111_s23 = scalar_lea.sflag (!%p105_p13), [#allocation3], %s498_s21  ;;  %s114_s24 = scalar_lea.vmem (!%p105_p13), [#allocation2], %s238_s22 }
  0x33   : > { %366 = dma.done.wait (%p557_p6), %s111_s23, 256  }
  0x34   : > { %368 = vsyncadd (%p557_p6), %s111_s23, 4294967040  ;;  %v133_v0 = vld [vmem:[%s114_s24] sm:$0xff]  ;;  %v134_v1 = vld [vmem:[%s114_s24 + $0x8] sm:$0xff]  ;;  %s246_s25 = sshll.u32 %s422_s10, 8  ;;  %s132_s26 = scalar_lea.vmem [#allocation5], %s238_s22 }
  0x35   : > { %v135_v2 = vmul.f32 %v133_v0, %v133_v0  ;;  %v136_v3 = vmul.f32 %v134_v1, %v134_v1  ;;  %s161_s27 = sshll.u32 %s132_s26, 4  ;;  %s510_s29 = scalar_lea.hbm %s547_s1, %s246_s25  ;;  %s162_s27 = int_to_ptr.vmem [resolvable:$true] %s161_s27 }
  0x36   : > { %s147_s30 = scalar_lea.sflag [#allocation4], %s498_s21  ;;  %s323_s2 = scalar_lea.vmem %s162_s27, 256 }
  0x37   : > { %v137_v4 = vadd.f32 %v136_v3, %v135_v2  ;;  %p324_p10 = scmp.ne.s32.totalorder %s162_s27, %s323_s2  ;;  %p558_p11 = scmp.ne.s32.totalorder %s552_s18, 0 }
  0x38   : > { %s390_s10 = smov [#allocation5]  }
  0x39   : > { %138 = vadd.xlane.f32.xlu0 %v137_v4  ;;  %p325_p12 = pnand %p324_p10, %p558_p11  ;;  %s327_s3 = sshll.u32 %s390_s10, 4  ;;  %s328_s3 = int_to_ptr.vmem [resolvable:$false] %s327_s3 }
  0x3a   : > { %s329_s4 = scalar_lea.vmem %s328_s3, 512  ;;  %p330_p2 = scmp.lt.s32.totalorder %s162_s27, %s328_s3 }
  0x3b   : > { %p326_p0 = pneg %p325_p12  ;;  %p331_p7 = scmp.lt.s32.totalorder %s329_s4, %s323_s2 }
  0x3d   : > { %p332_p8 = por %p331_p7, %p330_p2 }
  0x3f   : > { %p333_p9 = pnand %p332_p8, %p326_p0 }
  0xc2   : > { %v139_v5 = vpop.xlane.xlu0 %138 }
  0xc3   : > { %v140_v6 = vadd.f32 1e-10, %v139_v5 }
  0xc5   : > { %293 = vrsqrt.f32 %v140_v6 }
  0xd2   : > { %v294_v7 = vpop.eup %293 }
  0xd3   : > { %v142_v8 = vmul.f32 %v294_v7, %v133_v0  ;;  %v143_v9 = vmul.f32 %v294_v7, %v134_v1 }
  0xd5   : > { %144 = vst [vmem:[%s132_s26] sm:$0xff] %v142_v8  ;;  %145 = vst [vmem:[%s132_s26 + $0x8] sm:$0xff] %v143_v9 }
  0xd6   : > { %336 = shalt.err (!%p333_p9)
}
  0xd7   : > { %s337_s5 = scalar_lea.hbm %s510_s29, 256  ;;  %s341_s14 = scalar_lea.hbm %s547_s1, 2048 }
  0xd8   : > { %p338_p1 = scmp.ne.s32.totalorder %s510_s29, %s337_s5  ;;  %p342_p5 = scmp.lt.s32.totalorder %s510_s29, %s547_s1 }
  0xd9   : > { %p343_p13 = scmp.lt.s32.totalorder %s341_s14, %s337_s5 }
  0xda   : > { %p339_p3 = pnand %p338_p1, %p558_p11 }
  0xdb   : > { %p344_p6 = por %p343_p13, %p342_p5 }
  0xdc   : > { %p340_p4 = pneg %p339_p3 }
  0xde   : > { %p345_p10 = pnand %p344_p6, %p340_p4 }
  0xe0   : > { %348 = shalt.err (!%p345_p10)
}
  0xe1   : > { %249 = dma.vmem_to_hbm [thread:$0]  (%p558_p11), %s162_s27, 256, %s510_s29, %s147_s30  }
  0xe2 PF: > { %p260_p12 = scmp.ge.s32.totalorder %s387_s9, 2  ;;  %s173_s21 = sand.u32 1, %s375_s6  }
  0xe3   : > { %p559_p0 = scmp.ne.s32.totalorder %s553_s19, 0  ;;  %s174_s22 = scalar_lea.sflag [#allocation4], %s173_s21 }
  0xe5   : > { %p256_p2 = pnand %p260_p12, %p559_p0 }
  0xe7   : > { %p257_p7 = pneg %p256_p2 }
  0xe9   : > { %370 = dma.done.wait (%p257_p7), %s174_s22, 256  }
  0xea   : > { %372 = vsyncadd (%p257_p7), %s174_s22, 4294967040  ;;  %p14_p8 = scmp.ge.s32.totalorder %s426_s12, 10   ;;  %s560_s6 = smov %s379_s7 }
  0xeb   : > { %s561_s7 = smov %s383_s8  ;;  %s562_s8 = smov %s438_s15 }
  0xec   : > { %s563_s9 = smov %s426_s12  ;;  %16 = sbr.rel (!%p14_p8) target bundleno = 5 (0x5), region = 69 }
  0xf1   :  { %179 = vsyncpa [#allocation3], 1 }
  0xf2   :  { %181 = vsyncpa [#allocation3 + $0x1], 1 }
  0xf3   :  { %182 = vsyncpa [#allocation4], 1 }
  0xf4   :  { %184 = vsyncpa [#allocation4 + $0x1], 1 }

</bundles_post_ra>
